<compile_context>
chip_gen: v6e
topology: v6e:2x2x1
jax: 0.10.0
libtpu: 0.0.40
codegen_flags: <defaults>
</compile_context>

<pallas_src>
import functools

import numpy as np
import jax
import jax.numpy as jnp
from jax import lax
from jax.experimental import pallas as pl
from jax.experimental.pallas import tpu as pltpu


def _unet_conv_block_kernel(x_ref, w1_ref, b1_ref, w2_ref, b2_ref, o_ref, *, H, W, Wp):
    """Fused (3x3 conv + bias + ReLU) x 2 for one batch element, lane-dense layout.

      x_ref  : (1, C_in, (H+3)*Wp)  zero-padded input frame, flat (row stride Wp)
      w1_ref : (9, C_mid, C_in)     conv1 weights, one (C_mid, C_in) matrix per tap
      b1_ref : (C_mid, 1)
      w2_ref : (9, C_out, C_mid)    conv2 weights, per tap
      b2_ref : (C_out, 1)
      o_ref  : (1, C_out, H*Wp)     output on the padded-width grid (lane-dense)
    """
    P = H * Wp
    taps = [(kh, kw) for kh in range(3) for kw in range(3)]

    def conv3x3(frame, w_taps_ref):
        # 9 per-tap accumulating MXU dots; taps = static lane-shifted slices of the
        # flat padded frame (no patch-matrix materialization).
        acc = None
        for t, (kh, kw) in enumerate(taps):
            off = kh * Wp + kw
            part = jnp.dot(w_taps_ref[t], frame[:, off:off + P],
                           preferred_element_type=jnp.float32)
            acc = part if acc is None else acc + part
        return acc

    # ---- conv1 + bias + ReLU on the padded-width grid: (C_mid, P), lane-dense ----
    x = x_ref[0]                                              # (C_in, (H+3)*Wp)
    z1 = jnp.maximum(conv3x3(x, w1_ref) + b1_ref[...], 0.0)

    # Garbage columns (w >= W pick up wrap-around taps) -> 0.  They double as the
    # left/right zero border of conv2's frame after the re-embedding below.
    col = lax.broadcasted_iota(jnp.int32, (1, P), 1) % Wp
    z1 = jnp.where(col < W, z1, 0.0)

    # ---- re-embed z1 as conv2's zero-padded (H+3, Wp) frame (shift by one frame
    #      row + one column).  Pure value concatenate: no scratch, no memsets. ----
    c_mid = z1.shape[0]
    y_frame = jnp.concatenate(
        [jnp.zeros((c_mid, Wp + 1), jnp.float32),
         z1,
         jnp.zeros((c_mid, 2 * Wp - 1), jnp.float32)], axis=-1)   # (C_mid, (H+3)*Wp)

    # ---- conv2 + bias + ReLU: lane-dense epilogue + unmasked output store ----
    z2 = jnp.maximum(conv3x3(y_frame, w2_ref) + b2_ref[...], 0.0)  # (C_out, P)
    o_ref[...] = z2[None].astype(o_ref.dtype)


def _pick_padded_width(h, w):
    """Smallest row stride Wp >= W+2 with H*Wp % 128 == 0 (unmasked lane-dense
    stores); falls back to a multiple-of-8 stride if that would waste too much."""
    base = w + 2
    for wp in range(base, base + 128):
        if (h * wp) % 128 == 0:
            if wp - base <= max(8, w // 4):
                return wp
            break
    return ((base + 7) // 8) * 8


def _tap_weights(w_oihw):
    """PyTorch Conv2d weight (O, I, 3, 3) -> (9, O, I), taps ordered (kh, kw)."""
    o, i = w_oihw.shape[0], w_oihw.shape[1]
    return jnp.transpose(w_oihw, (2, 3, 0, 1)).reshape(9, o, i)


def unet_conv_block_forward(x_nchw, params, *, padding=True, batch_norm=False):
    """UNetConvBlock forward. x: (N, C_in, H, W) NCHW, params in PyTorch layout."""
    # TODO(synk): padding=False ('valid') and batch_norm=True (BatchNorm2d) paths are
    # not implemented; this mirrors UNetConvBlock(padding=True, batch_norm=False).
    if not padding or batch_norm:
        raise NotImplementedError("only padding=True, batch_norm=False is implemented")

    n, c_in, h, w = x_nchw.shape
    c_mid = params["w1"].shape[0]
    c_out = params["w2"].shape[0]
    wp = _pick_padded_width(h, w)
    p = h * wp
    ptot = (h + 3) * wp   # 1 top + 2 bottom pad rows keep every tap slice in-bounds

    # Zero-pad straight into the frame layout the kernel consumes (no transpose);
    # the pipeline DMAs the already-padded (C_in, Ptot) slab per batch element.
    x_frame = jnp.pad(x_nchw, ((0, 0), (0, 0), (1, 2), (1, wp - w - 1)))
    x_frame = x_frame.reshape(n, c_in, ptot).astype(jnp.float32)

    w1 = _tap_weights(params["w1"]).astype(jnp.float32)        # (9, C_mid, C_in)
    b1 = params["b1"].reshape(c_mid, 1).astype(jnp.float32)
    w2 = _tap_weights(params["w2"]).astype(jnp.float32)        # (9, C_out, C_mid)
    b2 = params["b2"].reshape(c_out, 1).astype(jnp.float32)

    kernel = functools.partial(_unet_conv_block_kernel, H=h, W=w, Wp=wp)
    # TODO(synk): for realistic UNet sizes (C >= 64, H = W >= 128) add an H-row-tile
    # grid axis (2-row halo) + bf16 tap dots to respect v7x's 64 MiB VMEM and to give
    # its second TensorCore work when N is 1 or odd.
    out_flat = pl.pallas_call(
        kernel,
        out_shape=jax.ShapeDtypeStruct((n, c_out, p), x_nchw.dtype),
        grid=(n,),
        in_specs=[
            pl.BlockSpec((1, c_in, ptot), lambda i: (i, 0, 0)),
            pl.BlockSpec((9, c_mid, c_in), lambda i: (0, 0, 0)),
            pl.BlockSpec((c_mid, 1), lambda i: (0, 0)),
            pl.BlockSpec((9, c_out, c_mid), lambda i: (0, 0, 0)),
            pl.BlockSpec((c_out, 1), lambda i: (0, 0)),
        ],
        out_specs=pl.BlockSpec((1, c_out, p), lambda i: (i, 0, 0)),
        compiler_params=pltpu.CompilerParams(
            dimension_semantics=("parallel",)),
    )(x_frame, w1, b1, w2, b2)

    # Drop the Wp-W garbage columns and return NCHW.
    # TODO(synk): in a fused UNet, hand the padded (N, C_out, H, Wp) layout to the
    # consumer (pool / next block) instead — this slice is a full HBM copy.
    return out_flat.reshape(n, c_out, h, wp)[:, :, :, :w]


# ----------------------------------------------------------------------------
# Pure-JAX reference (lax convs, NCHW like PyTorch) for correctness check
# ----------------------------------------------------------------------------
def _ref_conv(x, w, b, pad):
    out = lax.conv_general_dilated(x, w, (1, 1), ((pad, pad), (pad, pad)),
                                   dimension_numbers=("NCHW", "OIHW", "NCHW"))
    return out + b[None, :, None, None]


def reference_forward(x, params, *, padding=True):
    pad = 1 if padding else 0
    out = jax.nn.relu(_ref_conv(x, params["w1"], params["b1"], pad))
    out = jax.nn.relu(_ref_conv(out, params["w2"], params["b2"], pad))
    return out


# ----------------------------------------------------------------------------
if __name__ == "__main__":
    # UNetConvBlock(in_size=4, out_size=8, padding=True, batch_norm=False)
    N, IN, OUT, H, W = 2, 4, 8, 16, 16
    key = jax.random.PRNGKey(0)
    ks = jax.random.split(key, 5)

    x = jax.random.normal(ks[0], (N, IN, H, W), jnp.float32)
    params = {
        "w1": jax.random.normal(ks[1], (OUT, IN, 3, 3), jnp.float32) * 0.1,   # OIHW
        "b1": jax.random.normal(ks[2], (OUT,), jnp.float32) * 0.1,
        "w2": jax.random.normal(ks[3], (OUT, OUT, 3, 3), jnp.float32) * 0.1,  # OIHW
        "b2": jax.random.normal(ks[4], (OUT,), jnp.float32) * 0.1,
    }

    out = jax.block_until_ready(unet_conv_block_forward(x, params))
    ref = jax.block_until_ready(reference_forward(x, params))

    assert out.shape == (N, OUT, H, W), out.shape
    np.testing.assert_allclose(np.asarray(out), np.asarray(ref), rtol=1e-3, atol=1e-3)
    print("KERNEL_OK")
</pallas_src>

<mosaic_0001>
module attributes {stable_mosaic.version = 11 : i64} {
  func.func @_unet_conv_block_kernel(%arg0: i32, %arg1: memref<1x4x456xf32, #tpu.memory_space<vmem>>, %arg2: memref<9x8x4xf32, #tpu.memory_space<vmem>>, %arg3: memref<8x1xf32, #tpu.memory_space<vmem>>, %arg4: memref<9x8x8xf32, #tpu.memory_space<vmem>>, %arg5: memref<8x1xf32, #tpu.memory_space<vmem>>, %arg6: memref<1x8x384xf32, #tpu.memory_space<vmem>>) attributes {dimension_semantics = [#tpu.dimension_semantics<parallel>], iteration_bounds = array<i64: 2>, scalar_prefetch = 0 : i64, scratch_operands = 0 : i64, tpu.core_type = #tpu.core_type<tc>, window_params = [{transform_indices = @transform_0, window_bounds = array<i64: 1, 4, 456>}, {pipeline_mode = #tpu.pipeline_mode<synchronous>, transform_indices = @transform_1, window_bounds = array<i64: 9, 8, 4>}, {pipeline_mode = #tpu.pipeline_mode<synchronous>, transform_indices = @transform_2, window_bounds = array<i64: 8, 1>}, {pipeline_mode = #tpu.pipeline_mode<synchronous>, transform_indices = @transform_3, window_bounds = array<i64: 9, 8, 8>}, {pipeline_mode = #tpu.pipeline_mode<synchronous>, transform_indices = @transform_4, window_bounds = array<i64: 8, 1>}, {transform_indices = @transform_5, window_bounds = array<i64: 1, 8, 384>}]} {
    %c0 = arith.constant 0 : index
    %c0_0 = arith.constant 0 : index
    %c0_1 = arith.constant 0 : index
    %0 = vector.load %arg1[%c0, %c0_0, %c0_1] : memref<1x4x456xf32, #tpu.memory_space<vmem>>, vector<1x4x456xf32>
    %1 = vector.shape_cast %0 : vector<1x4x456xf32> to vector<4x456xf32>
    %c0_2 = arith.constant 0 : index
    %c0_3 = arith.constant 0 : index
    %c0_4 = arith.constant 0 : index
    %2 = vector.load %arg2[%c0_2, %c0_3, %c0_4] : memref<9x8x4xf32, #tpu.memory_space<vmem>>, vector<1x8x4xf32>
    %3 = vector.shape_cast %2 : vector<1x8x4xf32> to vector<8x4xf32>
    %4 = vector.extract_strided_slice %1 {offsets = [0, 0], sizes = [4, 384], strides = [1, 1]} : vector<4x456xf32> to vector<4x384xf32>
    %cst = arith.constant dense<0.000000e+00> : vector<8x384xf32>
    %5 = tpu.matmul %3, %4, %cst {dimension_numbers = #tpu.dot_dimension_numbers<[1], [0], [0], [1], [0, 0, 1, 1], [], []>} : vector<8x4xf32>, vector<4x384xf32>, vector<8x384xf32> -> vector<8x384xf32>
    %c1 = arith.constant 1 : index
    %c0_5 = arith.constant 0 : index
    %c0_6 = arith.constant 0 : index
    %6 = vector.load %arg2[%c1, %c0_5, %c0_6] : memref<9x8x4xf32, #tpu.memory_space<vmem>>, vector<1x8x4xf32>
    %7 = vector.shape_cast %6 : vector<1x8x4xf32> to vector<8x4xf32>
    %8 = vector.extract_strided_slice %1 {offsets = [0, 1], sizes = [4, 384], strides = [1, 1]} : vector<4x456xf32> to vector<4x384xf32>
    %cst_7 = arith.constant dense<0.000000e+00> : vector<8x384xf32>
    %9 = tpu.matmul %7, %8, %cst_7 {dimension_numbers = #tpu.dot_dimension_numbers<[1], [0], [0], [1], [0, 0, 1, 1], [], []>} : vector<8x4xf32>, vector<4x384xf32>, vector<8x384xf32> -> vector<8x384xf32>
    %10 = arith.addf %5, %9 : vector<8x384xf32>
    %c2 = arith.constant 2 : index
    %c0_8 = arith.constant 0 : index
    %c0_9 = arith.constant 0 : index
    %11 = vector.load %arg2[%c2, %c0_8, %c0_9] : memref<9x8x4xf32, #tpu.memory_space<vmem>>, vector<1x8x4xf32>
    %12 = vector.shape_cast %11 : vector<1x8x4xf32> to vector<8x4xf32>
    %13 = vector.extract_strided_slice %1 {offsets = [0, 2], sizes = [4, 384], strides = [1, 1]} : vector<4x456xf32> to vector<4x384xf32>
    %cst_10 = arith.constant dense<0.000000e+00> : vector<8x384xf32>
    %14 = tpu.matmul %12, %13, %cst_10 {dimension_numbers = #tpu.dot_dimension_numbers<[1], [0], [0], [1], [0, 0, 1, 1], [], []>} : vector<8x4xf32>, vector<4x384xf32>, vector<8x384xf32> -> vector<8x384xf32>
    %15 = arith.addf %10, %14 : vector<8x384xf32>
    %c3 = arith.constant 3 : index
    %c0_11 = arith.constant 0 : index
    %c0_12 = arith.constant 0 : index
    %16 = vector.load %arg2[%c3, %c0_11, %c0_12] : memref<9x8x4xf32, #tpu.memory_space<vmem>>, vector<1x8x4xf32>
    %17 = vector.shape_cast %16 : vector<1x8x4xf32> to vector<8x4xf32>
    %18 = vector.extract_strided_slice %1 {offsets = [0, 24], sizes = [4, 384], strides = [1, 1]} : vector<4x456xf32> to vector<4x384xf32>
    %cst_13 = arith.constant dense<0.000000e+00> : vector<8x384xf32>
    %19 = tpu.matmul %17, %18, %cst_13 {dimension_numbers = #tpu.dot_dimension_numbers<[1], [0], [0], [1], [0, 0, 1, 1], [], []>} : vector<8x4xf32>, vector<4x384xf32>, vector<8x384xf32> -> vector<8x384xf32>
    %20 = arith.addf %15, %19 : vector<8x384xf32>
    %c4 = arith.constant 4 : index
    %c0_14 = arith.constant 0 : index
    %c0_15 = arith.constant 0 : index
    %21 = vector.load %arg2[%c4, %c0_14, %c0_15] : memref<9x8x4xf32, #tpu.memory_space<vmem>>, vector<1x8x4xf32>
    %22 = vector.shape_cast %21 : vector<1x8x4xf32> to vector<8x4xf32>
    %23 = vector.extract_strided_slice %1 {offsets = [0, 25], sizes = [4, 384], strides = [1, 1]} : vector<4x456xf32> to vector<4x384xf32>
    %cst_16 = arith.constant dense<0.000000e+00> : vector<8x384xf32>
    %24 = tpu.matmul %22, %23, %cst_16 {dimension_numbers = #tpu.dot_dimension_numbers<[1], [0], [0], [1], [0, 0, 1, 1], [], []>} : vector<8x4xf32>, vector<4x384xf32>, vector<8x384xf32> -> vector<8x384xf32>
    %25 = arith.addf %20, %24 : vector<8x384xf32>
    %c5 = arith.constant 5 : index
    %c0_17 = arith.constant 0 : index
    %c0_18 = arith.constant 0 : index
    %26 = vector.load %arg2[%c5, %c0_17, %c0_18] : memref<9x8x4xf32, #tpu.memory_space<vmem>>, vector<1x8x4xf32>
    %27 = vector.shape_cast %26 : vector<1x8x4xf32> to vector<8x4xf32>
    %28 = vector.extract_strided_slice %1 {offsets = [0, 26], sizes = [4, 384], strides = [1, 1]} : vector<4x456xf32> to vector<4x384xf32>
    %cst_19 = arith.constant dense<0.000000e+00> : vector<8x384xf32>
    %29 = tpu.matmul %27, %28, %cst_19 {dimension_numbers = #tpu.dot_dimension_numbers<[1], [0], [0], [1], [0, 0, 1, 1], [], []>} : vector<8x4xf32>, vector<4x384xf32>, vector<8x384xf32> -> vector<8x384xf32>
    %30 = arith.addf %25, %29 : vector<8x384xf32>
    %c6 = arith.constant 6 : index
    %c0_20 = arith.constant 0 : index
    %c0_21 = arith.constant 0 : index
    %31 = vector.load %arg2[%c6, %c0_20, %c0_21] : memref<9x8x4xf32, #tpu.memory_space<vmem>>, vector<1x8x4xf32>
    %32 = vector.shape_cast %31 : vector<1x8x4xf32> to vector<8x4xf32>
    %33 = vector.extract_strided_slice %1 {offsets = [0, 48], sizes = [4, 384], strides = [1, 1]} : vector<4x456xf32> to vector<4x384xf32>
    %cst_22 = arith.constant dense<0.000000e+00> : vector<8x384xf32>
    %34 = tpu.matmul %32, %33, %cst_22 {dimension_numbers = #tpu.dot_dimension_numbers<[1], [0], [0], [1], [0, 0, 1, 1], [], []>} : vector<8x4xf32>, vector<4x384xf32>, vector<8x384xf32> -> vector<8x384xf32>
    %35 = arith.addf %30, %34 : vector<8x384xf32>
    %c7 = arith.constant 7 : index
    %c0_23 = arith.constant 0 : index
    %c0_24 = arith.constant 0 : index
    %36 = vector.load %arg2[%c7, %c0_23, %c0_24] : memref<9x8x4xf32, #tpu.memory_space<vmem>>, vector<1x8x4xf32>
    %37 = vector.shape_cast %36 : vector<1x8x4xf32> to vector<8x4xf32>
    %38 = vector.extract_strided_slice %1 {offsets = [0, 49], sizes = [4, 384], strides = [1, 1]} : vector<4x456xf32> to vector<4x384xf32>
    %cst_25 = arith.constant dense<0.000000e+00> : vector<8x384xf32>
    %39 = tpu.matmul %37, %38, %cst_25 {dimension_numbers = #tpu.dot_dimension_numbers<[1], [0], [0], [1], [0, 0, 1, 1], [], []>} : vector<8x4xf32>, vector<4x384xf32>, vector<8x384xf32> -> vector<8x384xf32>
    %40 = arith.addf %35, %39 : vector<8x384xf32>
    %c8 = arith.constant 8 : index
    %c0_26 = arith.constant 0 : index
    %c0_27 = arith.constant 0 : index
    %41 = vector.load %arg2[%c8, %c0_26, %c0_27] : memref<9x8x4xf32, #tpu.memory_space<vmem>>, vector<1x8x4xf32>
    %42 = vector.shape_cast %41 : vector<1x8x4xf32> to vector<8x4xf32>
    %43 = vector.extract_strided_slice %1 {offsets = [0, 50], sizes = [4, 384], strides = [1, 1]} : vector<4x456xf32> to vector<4x384xf32>
    %cst_28 = arith.constant dense<0.000000e+00> : vector<8x384xf32>
    %44 = tpu.matmul %42, %43, %cst_28 {dimension_numbers = #tpu.dot_dimension_numbers<[1], [0], [0], [1], [0, 0, 1, 1], [], []>} : vector<8x4xf32>, vector<4x384xf32>, vector<8x384xf32> -> vector<8x384xf32>
    %45 = arith.addf %40, %44 : vector<8x384xf32>
    %c0_29 = arith.constant 0 : index
    %c0_30 = arith.constant 0 : index
    %46 = vector.load %arg3[%c0_29, %c0_30] : memref<8x1xf32, #tpu.memory_space<vmem>>, vector<8x1xf32>
    %47 = vector.broadcast %46 : vector<8x1xf32> to vector<8x384xf32>
    %48 = arith.addf %45, %47 : vector<8x384xf32>
    %cst_31 = arith.constant 0.000000e+00 : f32
    %49 = vector.broadcast %cst_31 : f32 to vector<8x384xf32>
    %50 = arith.maximumf %48, %49 : vector<8x384xf32>
    %51 = tpu.iota {dimensions = array<i32: 1>} : vector<1x384xi32>
    %c24_i32 = arith.constant 24 : i32
    %c0_i32 = arith.constant 0 : i32
    %52 = arith.cmpi eq, %c24_i32, %c0_i32 : i32
    %c1_i32 = arith.constant 1 : i32
    %53 = arith.select %52, %c1_i32, %c24_i32 : i32
    %54 = vector.broadcast %53 : i32 to vector<1x384xi32>
    %55 = arith.remsi %51, %54 : vector<1x384xi32>
    %c0_i32_32 = arith.constant 0 : i32
    %56 = vector.broadcast %c0_i32_32 : i32 to vector<1x384xi32>
    %57 = arith.cmpi ne, %55, %56 : vector<1x384xi32>
    %c0_i32_33 = arith.constant 0 : i32
    %58 = vector.broadcast %c0_i32_33 : i32 to vector<1x384xi32>
    %59 = arith.cmpi slt, %55, %58 : vector<1x384xi32>
    %c0_i32_34 = arith.constant 0 : i32
    %60 = arith.cmpi slt, %53, %c0_i32_34 : i32
    %61 = vector.broadcast %60 : i1 to vector<1x384xi1>
    %62 = vector.broadcast %61 : vector<1x384xi1> to vector<1x384xi1>
    %63 = arith.xori %59, %62 : vector<1x384xi1>
    %64 = arith.andi %63, %57 : vector<1x384xi1>
    %65 = vector.broadcast %53 : i32 to vector<1x384xi32>
    %66 = arith.addi %55, %65 : vector<1x384xi32>
    %67 = arith.select %64, %66, %55 : vector<1x384xi1>, vector<1x384xi32>
    %c16_i32 = arith.constant 16 : i32
    %68 = vector.broadcast %c16_i32 : i32 to vector<1x384xi32>
    %69 = arith.cmpi slt, %67, %68 : vector<1x384xi32>
    %cst_35 = arith.constant 0.000000e+00 : f32
    %70 = vector.shape_cast %69 : vector<1x384xi1> to vector<1x384xi1>
    %71 = vector.broadcast %70 : vector<1x384xi1> to vector<8x384xi1>
    %72 = vector.broadcast %cst_35 : f32 to vector<8x384xf32>
    %73 = arith.select %71, %50, %72 : vector<8x384xi1>, vector<8x384xf32>
    %cst_36 = arith.constant 0.000000e+00 : f32
    %74 = vector.broadcast %cst_36 : f32 to vector<8x25xf32>
    %cst_37 = arith.constant 0.000000e+00 : f32
    %75 = vector.broadcast %cst_37 : f32 to vector<8x47xf32>
    %76 = tpu.concatenate %74, %73, %75 in 1 : vector<8x25xf32>, vector<8x384xf32>, vector<8x47xf32> -> vector<8x456xf32>
    %c0_38 = arith.constant 0 : index
    %c0_39 = arith.constant 0 : index
    %c0_40 = arith.constant 0 : index
    %77 = vector.load %arg4[%c0_38, %c0_39, %c0_40] : memref<9x8x8xf32, #tpu.memory_space<vmem>>, vector<1x8x8xf32>
    %78 = vector.shape_cast %77 : vector<1x8x8xf32> to vector<8x8xf32>
    %79 = vector.extract_strided_slice %76 {offsets = [0, 0], sizes = [8, 384], strides = [1, 1]} : vector<8x456xf32> to vector<8x384xf32>
    %cst_41 = arith.constant dense<0.000000e+00> : vector<8x384xf32>
    %80 = tpu.matmul %78, %79, %cst_41 {dimension_numbers = #tpu.dot_dimension_numbers<[1], [0], [0], [1], [0, 0, 1, 1], [], []>} : vector<8x8xf32>, vector<8x384xf32>, vector<8x384xf32> -> vector<8x384xf32>
    %c1_42 = arith.constant 1 : index
    %c0_43 = arith.constant 0 : index
    %c0_44 = arith.constant 0 : index
    %81 = vector.load %arg4[%c1_42, %c0_43, %c0_44] : memref<9x8x8xf32, #tpu.memory_space<vmem>>, vector<1x8x8xf32>
    %82 = vector.shape_cast %81 : vector<1x8x8xf32> to vector<8x8xf32>
    %83 = vector.extract_strided_slice %76 {offsets = [0, 1], sizes = [8, 384], strides = [1, 1]} : vector<8x456xf32> to vector<8x384xf32>
    %cst_45 = arith.constant dense<0.000000e+00> : vector<8x384xf32>
    %84 = tpu.matmul %82, %83, %cst_45 {dimension_numbers = #tpu.dot_dimension_numbers<[1], [0], [0], [1], [0, 0, 1, 1], [], []>} : vector<8x8xf32>, vector<8x384xf32>, vector<8x384xf32> -> vector<8x384xf32>
    %85 = arith.addf %80, %84 : vector<8x384xf32>
    %c2_46 = arith.constant 2 : index
    %c0_47 = arith.constant 0 : index
    %c0_48 = arith.constant 0 : index
    %86 = vector.load %arg4[%c2_46, %c0_47, %c0_48] : memref<9x8x8xf32, #tpu.memory_space<vmem>>, vector<1x8x8xf32>
    %87 = vector.shape_cast %86 : vector<1x8x8xf32> to vector<8x8xf32>
    %88 = vector.extract_strided_slice %76 {offsets = [0, 2], sizes = [8, 384], strides = [1, 1]} : vector<8x456xf32> to vector<8x384xf32>
    %cst_49 = arith.constant dense<0.000000e+00> : vector<8x384xf32>
    %89 = tpu.matmul %87, %88, %cst_49 {dimension_numbers = #tpu.dot_dimension_numbers<[1], [0], [0], [1], [0, 0, 1, 1], [], []>} : vector<8x8xf32>, vector<8x384xf32>, vector<8x384xf32> -> vector<8x384xf32>
    %90 = arith.addf %85, %89 : vector<8x384xf32>
    %c3_50 = arith.constant 3 : index
    %c0_51 = arith.constant 0 : index
    %c0_52 = arith.constant 0 : index
    %91 = vector.load %arg4[%c3_50, %c0_51, %c0_52] : memref<9x8x8xf32, #tpu.memory_space<vmem>>, vector<1x8x8xf32>
    %92 = vector.shape_cast %91 : vector<1x8x8xf32> to vector<8x8xf32>
    %93 = vector.extract_strided_slice %76 {offsets = [0, 24], sizes = [8, 384], strides = [1, 1]} : vector<8x456xf32> to vector<8x384xf32>
    %cst_53 = arith.constant dense<0.000000e+00> : vector<8x384xf32>
    %94 = tpu.matmul %92, %93, %cst_53 {dimension_numbers = #tpu.dot_dimension_numbers<[1], [0], [0], [1], [0, 0, 1, 1], [], []>} : vector<8x8xf32>, vector<8x384xf32>, vector<8x384xf32> -> vector<8x384xf32>
    %95 = arith.addf %90, %94 : vector<8x384xf32>
    %c4_54 = arith.constant 4 : index
    %c0_55 = arith.constant 0 : index
    %c0_56 = arith.constant 0 : index
    %96 = vector.load %arg4[%c4_54, %c0_55, %c0_56] : memref<9x8x8xf32, #tpu.memory_space<vmem>>, vector<1x8x8xf32>
    %97 = vector.shape_cast %96 : vector<1x8x8xf32> to vector<8x8xf32>
    %98 = vector.extract_strided_slice %76 {offsets = [0, 25], sizes = [8, 384], strides = [1, 1]} : vector<8x456xf32> to vector<8x384xf32>
    %cst_57 = arith.constant dense<0.000000e+00> : vector<8x384xf32>
    %99 = tpu.matmul %97, %98, %cst_57 {dimension_numbers = #tpu.dot_dimension_numbers<[1], [0], [0], [1], [0, 0, 1, 1], [], []>} : vector<8x8xf32>, vector<8x384xf32>, vector<8x384xf32> -> vector<8x384xf32>
    %100 = arith.addf %95, %99 : vector<8x384xf32>
    %c5_58 = arith.constant 5 : index
    %c0_59 = arith.constant 0 : index
    %c0_60 = arith.constant 0 : index
    %101 = vector.load %arg4[%c5_58, %c0_59, %c0_60] : memref<9x8x8xf32, #tpu.memory_space<vmem>>, vector<1x8x8xf32>
    %102 = vector.shape_cast %101 : vector<1x8x8xf32> to vector<8x8xf32>
    %103 = vector.extract_strided_slice %76 {offsets = [0, 26], sizes = [8, 384], strides = [1, 1]} : vector<8x456xf32> to vector<8x384xf32>
    %cst_61 = arith.constant dense<0.000000e+00> : vector<8x384xf32>
    %104 = tpu.matmul %102, %103, %cst_61 {dimension_numbers = #tpu.dot_dimension_numbers<[1], [0], [0], [1], [0, 0, 1, 1], [], []>} : vector<8x8xf32>, vector<8x384xf32>, vector<8x384xf32> -> vector<8x384xf32>
    %105 = arith.addf %100, %104 : vector<8x384xf32>
    %c6_62 = arith.constant 6 : index
    %c0_63 = arith.constant 0 : index
    %c0_64 = arith.constant 0 : index
    %106 = vector.load %arg4[%c6_62, %c0_63, %c0_64] : memref<9x8x8xf32, #tpu.memory_space<vmem>>, vector<1x8x8xf32>
    %107 = vector.shape_cast %106 : vector<1x8x8xf32> to vector<8x8xf32>
    %108 = vector.extract_strided_slice %76 {offsets = [0, 48], sizes = [8, 384], strides = [1, 1]} : vector<8x456xf32> to vector<8x384xf32>
    %cst_65 = arith.constant dense<0.000000e+00> : vector<8x384xf32>
    %109 = tpu.matmul %107, %108, %cst_65 {dimension_numbers = #tpu.dot_dimension_numbers<[1], [0], [0], [1], [0, 0, 1, 1], [], []>} : vector<8x8xf32>, vector<8x384xf32>, vector<8x384xf32> -> vector<8x384xf32>
    %110 = arith.addf %105, %109 : vector<8x384xf32>
    %c7_66 = arith.constant 7 : index
    %c0_67 = arith.constant 0 : index
    %c0_68 = arith.constant 0 : index
    %111 = vector.load %arg4[%c7_66, %c0_67, %c0_68] : memref<9x8x8xf32, #tpu.memory_space<vmem>>, vector<1x8x8xf32>
    %112 = vector.shape_cast %111 : vector<1x8x8xf32> to vector<8x8xf32>
    %113 = vector.extract_strided_slice %76 {offsets = [0, 49], sizes = [8, 384], strides = [1, 1]} : vector<8x456xf32> to vector<8x384xf32>
    %cst_69 = arith.constant dense<0.000000e+00> : vector<8x384xf32>
    %114 = tpu.matmul %112, %113, %cst_69 {dimension_numbers = #tpu.dot_dimension_numbers<[1], [0], [0], [1], [0, 0, 1, 1], [], []>} : vector<8x8xf32>, vector<8x384xf32>, vector<8x384xf32> -> vector<8x384xf32>
    %115 = arith.addf %110, %114 : vector<8x384xf32>
    %c8_70 = arith.constant 8 : index
    %c0_71 = arith.constant 0 : index
    %c0_72 = arith.constant 0 : index
    %116 = vector.load %arg4[%c8_70, %c0_71, %c0_72] : memref<9x8x8xf32, #tpu.memory_space<vmem>>, vector<1x8x8xf32>
    %117 = vector.shape_cast %116 : vector<1x8x8xf32> to vector<8x8xf32>
    %118 = vector.extract_strided_slice %76 {offsets = [0, 50], sizes = [8, 384], strides = [1, 1]} : vector<8x456xf32> to vector<8x384xf32>
    %cst_73 = arith.constant dense<0.000000e+00> : vector<8x384xf32>
    %119 = tpu.matmul %117, %118, %cst_73 {dimension_numbers = #tpu.dot_dimension_numbers<[1], [0], [0], [1], [0, 0, 1, 1], [], []>} : vector<8x8xf32>, vector<8x384xf32>, vector<8x384xf32> -> vector<8x384xf32>
    %120 = arith.addf %115, %119 : vector<8x384xf32>
    %c0_74 = arith.constant 0 : index
    %c0_75 = arith.constant 0 : index
    %121 = vector.load %arg5[%c0_74, %c0_75] : memref<8x1xf32, #tpu.memory_space<vmem>>, vector<8x1xf32>
    %122 = vector.broadcast %121 : vector<8x1xf32> to vector<8x384xf32>
    %123 = arith.addf %120, %122 : vector<8x384xf32>
    %cst_76 = arith.constant 0.000000e+00 : f32
    %124 = vector.broadcast %cst_76 : f32 to vector<8x384xf32>
    %125 = arith.maximumf %123, %124 : vector<8x384xf32>
    %126 = vector.shape_cast %125 : vector<8x384xf32> to vector<1x8x384xf32>
    %c0_77 = arith.constant 0 : index
    %c0_78 = arith.constant 0 : index
    %c0_79 = arith.constant 0 : index
    %127 = vector.load %arg6[%c0_77, %c0_78, %c0_79] : memref<1x8x384xf32, #tpu.memory_space<vmem>>, vector<1x8x384xf32>
    tpu.vector_store %arg6[%c0_77, %c0_78, %c0_79], %126 {strides = array<i32>} : memref<1x8x384xf32, #tpu.memory_space<vmem>>, vector<1x8x384xf32>,
    return
  }
  func.func @transform_0(%arg0: i32) -> (i32, i32, i32) {
    %c0_i32 = arith.constant 0 : i32
    %c0_i32_0 = arith.constant 0 : i32
    %c0_i32_1 = arith.constant 0 : i32
    return %arg0, %c0_i32, %c0_i32_0 : i32, i32, i32
  }
  func.func @transform_1(%arg0: i32) -> (i32, i32, i32) {
    %c0_i32 = arith.constant 0 : i32
    %c0_i32_0 = arith.constant 0 : i32
    %c0_i32_1 = arith.constant 0 : i32
    %c0_i32_2 = arith.constant 0 : i32
    return %c0_i32, %c0_i32_0, %c0_i32_1 : i32, i32, i32
  }
  func.func @transform_2(%arg0: i32) -> (i32, i32) {
    %c0_i32 = arith.constant 0 : i32
    %c0_i32_0 = arith.constant 0 : i32
    %c0_i32_1 = arith.constant 0 : i32
    return %c0_i32, %c0_i32_0 : i32, i32
  }
  func.func @transform_3(%arg0: i32) -> (i32, i32, i32) {
    %c0_i32 = arith.constant 0 : i32
    %c0_i32_0 = arith.constant 0 : i32
    %c0_i32_1 = arith.constant 0 : i32
    %c0_i32_2 = arith.constant 0 : i32
    return %c0_i32, %c0_i32_0, %c0_i32_1 : i32, i32, i32
  }
  func.func @transform_4(%arg0: i32) -> (i32, i32) {
    %c0_i32 = arith.constant 0 : i32
    %c0_i32_0 = arith.constant 0 : i32
    %c0_i32_1 = arith.constant 0 : i32
    return %c0_i32, %c0_i32_0 : i32, i32
  }
  func.func @transform_5(%arg0: i32) -> (i32, i32, i32) {
    %c0_i32 = arith.constant 0 : i32
    %c0_i32_0 = arith.constant 0 : i32
    %c0_i32_1 = arith.constant 0 : i32
    return %arg0, %c0_i32, %c0_i32_0 : i32, i32, i32
  }
}

</mosaic_0001>

<bundles_post_ra>
// kernel: tpu_custom_call.1
= control target key start
LH: loop header
LB: loop body
LE: loop exit
PB: predicated region body
PF: predicated region fallthrough
CT: control target
= control target key end

     0   :  { %10 = vsyncpa [#allocation3], 0  ;;  %s4221_s0 = inlined_call_operand.vmem [shape: f32[2,4,456], index: 0, kind: input, shape index: {}]   ;;  %s4222_s1 = inlined_call_operand.vmem [shape: f32[9,8,4], index: 1, kind: input, shape index: {}]   ;;  %s4223_s2 = inlined_call_operand.vmem [shape: f32[8,1], index: 2, kind: input, shape index: {}]   ;;  %s4224_s3 = inlined_call_operand.vmem [shape: f32[9,8,8], index: 3, kind: input, shape index: {}]   ;;  %s4225_s4 = inlined_call_operand.vmem [shape: f32[8,1], index: 4, kind: input, shape index: {}]   ;;  %s4226_s5 = inlined_call_operand.hbm [shape: f32[2,8,384], index: 5, kind: output, shape index: {}]  }
   0x1   :  { %12 = vsyncpa [#allocation3 + $0x1], 0  ;;  %s3732_s18 = smov 0   ;;  %s3734_s19 = smov 0  }
   0x2   :  { %s3736_s20 = smov 0   ;;  %s3738_s21 = smov 0  }
   0x3 LB: > { %s3753_s22 = sadd.s32 4294967295, %s3687_s21   ;;  %s3347_s23 = sadd.s32 4294967294, %s3687_s21   ;;  %s3687_s21 = sphi %s3738_s21, %s4242_s21   ;;  %s3683_s20 = sphi %s3736_s20, %s4241_s20   ;;  %s3679_s19 = sphi %s3734_s19, %s4240_s19   ;;  %s3675_s18 = sphi %s3732_s18, %s4239_s18  }
   0x4   : > { %s3757_s24 = sadd.s32 1, %s3687_s21   ;;  %s135_s25 = sadd.s32 1, %s3683_s20 }
   0x5   : > { %s132_s26 = ssub.s32 %s3687_s21, %s3757_s24  ;;  %p145_p0 = scmp.ne.s32.totalorder %s3683_s20, %s3679_s19 }
   0x6   : > { %p133_p1 = scmp.eq.s32.totalorder %s132_s26, 0  ;;  %p146_p2 = scmp.eq.s32.totalorder %s3753_s22, 1 }
   0x7   : > { %p151_p3 = scmp.ne.s32.totalorder %s3679_s19, %s3675_s18  ;;  %p152_p4 = scmp.eq.s32.totalorder %s3347_s23, 1 }
   0x8   : > { %s3768_s27 = scalar_select %p133_p1, %s3683_s20, %s135_s25  }
   0x9   : > { %p3770_p5 = por %p146_p2, %p145_p0  ;;  %p3774_p6 = por %p152_p4, %p151_p3 }
   0xa   : > { %p3350_p7 = scmp.ge.s32.totalorder %s3687_s21, 1  ;;  %p190_p8 = scmp.lt.s32.totalorder %s3687_s21, 3 }
   0xc   : > { %p191_p9 = pnand %p3350_p7, %p190_p8 }
   0xd   : > { %p218_p10 = scmp.lt.s32.totalorder (!%p191_p9), %s3753_s22, 1  ;;  %s3691_s10 = smov (!%p191_p9), 127  }
   0xe   : > { %194 = sbr.rel (%p191_p9) target bundleno = 908 (0x38c), region = 40  ;;  %s3692_s11 = smov (!%p191_p9), 126  }
   0xf   : > { %s3693_s12 = smov (!%p191_p9), 104   ;;  %s3694_s13 = smov (!%p191_p9), 103  }
  0x10   : > { %s3695_s14 = smov (!%p191_p9), 102   ;;  %s3696_s15 = smov (!%p191_p9), 80  }
  0x11   : > { %s3697_s16 = smov (!%p191_p9), 79   ;;  %s3699_s17 = smov (!%p191_p9), 78  }
  0x13   : > { %v3689_v0 = vmov 0.0   ;;  %s219_s30 = scalar_select %p218_p10, %s3753_s22, 1  ;;  %vm3690_vm0 = vmmov 0   ;;  %v3698_v5 = vmov 0   ;;  %v1715_v6 = vld [vmem:[%s4223_s2] sm:$0xff]  ;;  %vm240_vm1 = vcmask 1039360  }
  0x14   : > { %319 = vmatprep.mubr.f32.mxu0 %v3689_v0  ;;  %3474 = vmatprep.subr.mxu1 %v3689_v0  ;;  %vm248_vm2 = vcmask 1043456   ;;  %v3353_v13 = vld [vmem:[%s4222_s1 + $0x8] sm:$0xff]  ;;  %vm244_vm3 = vcmask 31744   ;;  %vm556_vm4 = vcmask 1031168   ;;  %v225_v18 = vld [vmem:[%s4222_s1] sm:$0xff]  ;;  %vm723_vm5 = vcmask 850944  }
  0x15   : > { %3476 = vmatprep.mubr.msk.f32.mxu1 %vm3690_vm0, %v3689_v0  ;;  %s3437_s6 = sshll.u32 %s219_s30, 4  ;;  %3623 = vset.pattern.permute.xlu0 %v3698_v5  ;;  %v3364_v23 = vld [vmem:[%s4222_s1 + $0x10] sm:$0xff]  ;;  %v3370_v29 = vld [vmem:[%s4222_s1 + $0x18] sm:$0xff]  ;;  %vm890_vm6 = vcmask 842752   ;;  %v3376_v37 = vld [vmem:[%s4222_s1 + $0x20] sm:$0xff]  ;;  %vm1057_vm7 = vcmask 834560  }
  0x16   : > { %s222_s9 = scalar_lea.vmem %s4221_s0, %s3437_s6  ;;  %3624 = vset.pattern.permute.xlu1 %v3698_v5  ;;  %v3382_v45 = vld [vmem:[%s4222_s1 + $0x28] sm:$0xff]  ;;  %vm1224_vm8 = vcmask 654336   ;;  %v3388_v53 = vld [vmem:[%s4222_s1 + $0x30] sm:$0xff]  ;;  %vm1391_vm9 = vcmask 646144   ;;  %v3394_v61 = vld [vmem:[%s4222_s1 + $0x38] sm:$0xff]  ;;  %vm4227_vm10 = vcmask 637952  }
  0x17   : > { %v3789_v1 = vld [vmem:[%s222_s9 + $0x8] sm:$0xff]  ;;  %v3791_v2 = vld [vmem:[%s222_s9] sm:$0xff]  ;;  %s3700_s6 = smov 25  }
  0x18   : > { %236 = vrot.lane.b32.xlu0 %v3789_v1, %s3691_s10  ;;  %232 = vrot.lane.b32.xlu1 %v3791_v2, %s3691_s10  ;;  %v230_v3 = vcombine.high %v3791_v2, %v3791_v2  ;;  %v231_v4 = vcombine.high %v3789_v1, %v3789_v1 }
  0x1c   : > { %552 = vrot.lane.b32.xlu1 %v3789_v1, %s3692_s11  ;;  %234 = vrot.lane.b32.xlu0 %v230_v3, %s3691_s10 }
  0x20   : > { %238 = vrot.lane.b32.xlu1 %v231_v4, %s3691_s10  ;;  %550 = vrot.lane.b32.xlu0 %v230_v3, %s3692_s11 }
  0x24   : > { %554 = vrot.lane.b32.xlu1 %v231_v4, %s3692_s11  ;;  %548 = vrot.lane.b32.xlu0 %v3791_v2, %s3692_s11 }
  0x28   : > { %719 = vrot.lane.b32.xlu1 %v3789_v1, %s3693_s12  ;;  %717 = vrot.lane.b32.xlu0 %v230_v3, %s3693_s12 }
  0x2c   : > { %721 = vrot.lane.b32.xlu1 %v231_v4, %s3693_s12  ;;  %715 = vrot.lane.b32.xlu0 %v3791_v2, %s3693_s12 }
  0x30   : > { %886 = vrot.lane.b32.xlu1 %v3789_v1, %s3694_s13  ;;  %884 = vrot.lane.b32.xlu0 %v230_v3, %s3694_s13 }
  0x34   : > { %888 = vrot.lane.b32.xlu1 %v231_v4, %s3694_s13  ;;  %882 = vrot.lane.b32.xlu0 %v3791_v2, %s3694_s13 }
  0x38   : > { %1053 = vrot.lane.b32.xlu1 %v3789_v1, %s3695_s14  ;;  %1051 = vrot.lane.b32.xlu0 %v230_v3, %s3695_s14 }
  0x3c   : > { %1055 = vrot.lane.b32.xlu1 %v231_v4, %s3695_s14  ;;  %1049 = vrot.lane.b32.xlu0 %v3791_v2, %s3695_s14 }
  0x40   : > { %1220 = vrot.lane.b32.xlu1 %v3789_v1, %s3696_s15  ;;  %1218 = vrot.lane.b32.xlu0 %v230_v3, %s3696_s15 }
  0x44   : > { %1222 = vrot.lane.b32.xlu1 %v231_v4, %s3696_s15  ;;  %1216 = vrot.lane.b32.xlu0 %v3791_v2, %s3696_s15 }
  0x48   : > { %1387 = vrot.lane.b32.xlu1 %v3789_v1, %s3697_s16  ;;  %1385 = vrot.lane.b32.xlu0 %v230_v3, %s3697_s16 }
  0x4c   : > { %1389 = vrot.lane.b32.xlu1 %v231_v4, %s3697_s16  ;;  %1383 = vrot.lane.b32.xlu0 %v3791_v2, %s3697_s16 }
  0x50   : > { %1554 = vrot.lane.b32.xlu1 %v3789_v1, %s3699_s17  ;;  %1552 = vrot.lane.b32.xlu0 %v230_v3, %s3699_s17 }
  0x54   : > { %1556 = vrot.lane.b32.xlu1 %v231_v4, %s3699_s17  ;;  %1550 = vrot.lane.b32.xlu0 %v3791_v2, %s3699_s17 }
  0x58   : > { %1718 = vperm.xlu0 %3623, %v1715_v6   ;;  %v3400_v6 = vld [vmem:[%s4222_s1 + $0x40] sm:$0xff] }
  0x8a   : > { %v237_v7 = vpop.permute.xlu0 %236  ;;  %v233_v8 = vpop.permute.xlu1 %232 }
  0x8e   : > { %v553_v9 = vpop.permute.xlu1 %552  ;;  %v235_v10 = vpop.permute.xlu0 %234 }
  0x8f   : > { %v242_v11 = vsel %vm240_vm1, %v235_v10, %v237_v7  ;;  %v241_v12 = vsel %vm240_vm1, %v233_v8, %v235_v10 }
  0x90   : > { %3354 = vmatprep.subr.msk.mxu0 %vm248_vm2, %v242_v11 }
  0x91   : > { %3355 = vmatpush1.msk.msra.mxu0 %vm248_vm2, %v241_v12 }
  0x92   : > { %v239_v14 = vpop.permute.xlu1 %238  ;;  %3359 = vmatprep.subr.msk.mxu0 %vm248_vm2, %v230_v3  ;;  %v551_v15 = vpop.permute.xlu0 %550  ;;  %3356 = vmatmul.mubr.msk.f32.vlgmr.msra.gmra.mxu0 %vm244_vm3, %v3353_v13 }
  0x93   : > { %v558_v16 = vsel %vm556_vm4, %v551_v15, %v553_v9  ;;  %3360 = vmatpush1.msk.msra.mxu0 %vm248_vm2, %v3791_v2  ;;  %v243_v17 = vsel %vm240_vm1, %v237_v7, %v239_v14  ;;  %469 = vmatprep.mubr.f32.mxu0 %v3689_v0 }
  0x94   : > { %3475 = vmatpush3.msk.msra.mxu1 %vm248_vm2, %v243_v17  ;;  %3365 = vmatprep.subr.msk.mxu0 %vm248_vm2, %v558_v16 }
  0x95   : > { %3477 = vmatmul.mubr.msk.f32.vlgmr.msra.gmra.mxu1 %vm244_vm3, %v3353_v13  ;;  %3479 = vmatprep.subr.mxu1 %v3689_v0 }
  0x96   : > { %v555_v19 = vpop.permute.xlu1 %554  ;;  %v549_v20 = vpop.permute.xlu0 %548  ;;  %3480 = vmatpush3.msk.msra.mxu1 %vm248_vm2, %v3789_v1  ;;  %3361 = vmatmul.mubr.msk.f32.vlgmr.msra.gmra.mxu0 %vm244_vm3, %v225_v18 }
  0x97   : > { %v559_v21 = vsel %vm556_vm4, %v553_v9, %v555_v19  ;;  %v557_v22 = vsel %vm556_vm4, %v549_v20, %v551_v15  ;;  %3481 = vmatprep.mubr.msk.f32.mxu1 %vm3690_vm0, %v3689_v0  ;;  %3484 = vmatprep.subr.mxu1 %v3689_v0 }
  0x98   : > { %3366 = vmatpush1.msk.msra.mxu0 %vm248_vm2, %v557_v22  ;;  %633 = vmatprep.mubr.f32.mxu0 %v3689_v0 }
  0x99   : > { %3482 = vmatmul.mubr.msk.f32.vlgmr.msra.gmra.mxu1 %vm244_vm3, %v225_v18 }
  0x9a   : > { %3485 = vmatpush3.msk.msra.mxu1 %vm248_vm2, %v559_v21  ;;  %v720_v24 = vpop.permute.xlu1 %719  ;;  %v718_v25 = vpop.permute.xlu0 %717  ;;  %3486 = vmatprep.mubr.msk.f32.mxu1 %vm3690_vm0, %v3689_v0  ;;  %v1727_v21 = vlaneseq }
  0x9b   : > { %v725_v26 = vsel %vm723_vm5, %v718_v25, %v720_v24  ;;  %3489 = vmatprep.subr.mxu1 %v3689_v0  ;;  %3367 = vmatmul.mubr.msk.f32.vlgmr.msra.gmra.mxu0 %vm244_vm3, %v3364_v23 }
  0x9c   : > { %3371 = vmatprep.subr.msk.mxu0 %vm248_vm2, %v725_v26  ;;  %800 = vmatprep.mubr.f32.mxu0 %v3689_v0 }
  0x9d   : > { %3487 = vmatmul.mubr.msk.f32.vlgmr.msra.gmra.mxu1 %vm244_vm3, %v3364_v23 }
  0x9e   : > { %v722_v27 = vpop.permute.xlu1 %721  ;;  %v716_v28 = vpop.permute.xlu0 %715  ;;  %3491 = vmatprep.mubr.msk.f32.mxu1 %vm3690_vm0, %v3689_v0 }
  0x9f   : > { %v726_v30 = vsel %vm723_vm5, %v720_v24, %v722_v27  ;;  %v724_v31 = vsel %vm723_vm5, %v716_v28, %v718_v25  ;;  %v1728_v24 = vand.u32 127, %v1727_v21 }
  0xa0   : > { %3372 = vmatpush1.msk.msra.mxu0 %vm248_vm2, %v724_v31  ;;  %3490 = vmatpush3.msk.msra.mxu1 %vm248_vm2, %v726_v30 }
  0xa1   : > { %3494 = vmatprep.subr.mxu1 %v3689_v0  ;;  %3373 = vmatmul.mubr.msk.f32.vlgmr.msra.gmra.mxu0 %vm244_vm3, %v3370_v29  ;;  %v1730_v27 = vadd.s32 256, %v1728_v24 }
  0xa2   : > { %v887_v32 = vpop.permute.xlu1 %886  ;;  %v885_v33 = vpop.permute.xlu0 %884  ;;  %3492 = vmatmul.mubr.msk.f32.vlgmr.msra.gmra.mxu1 %vm244_vm3, %v3370_v29  ;;  %967 = vmatprep.mubr.f32.mxu0 %v3689_v0 }
  0xa3   : > { %v892_v34 = vsel %vm890_vm6, %v885_v33, %v887_v32  ;;  %3496 = vmatprep.mubr.msk.f32.mxu1 %vm3690_vm0, %v3689_v0  ;;  %v3982_v30 = vmul.u32.u64.low 2863311531, %v1730_v27  ;;  %v3983_v31 = vmul.u32.u64.high 2863311531, %v1730_v27, %v3982_v30 }
  0xa4   : > { %3377 = vmatprep.subr.msk.mxu0 %vm248_vm2, %v892_v34 }
  0xa6   : > { %v889_v35 = vpop.permute.xlu1 %888  ;;  %v883_v36 = vpop.permute.xlu0 %882 }
  0xa7   : > { %v893_v38 = vsel %vm890_vm6, %v887_v32, %v889_v35  ;;  %v891_v39 = vsel %vm890_vm6, %v883_v36, %v885_v33  ;;  %v3985_v33 = vmul.u32.u64.low 2863311531, %v1728_v24  ;;  %v3986_v34 = vmul.u32.u64.high 2863311531, %v1728_v24, %v3985_v33 }
  0xa8   : > { %3378 = vmatpush1.msk.msra.mxu0 %vm248_vm2, %v891_v39  ;;  %3495 = vmatpush3.msk.msra.mxu1 %vm248_vm2, %v893_v38  ;;  %v1729_v35 = vadd.s32 128, %v1728_v24 }
  0xa9   : > { %3379 = vmatmul.mubr.msk.f32.vlgmr.msra.gmra.mxu0 %vm244_vm3, %v3376_v37  ;;  %3497 = vmatmul.mubr.msk.f32.vlgmr.msra.gmra.mxu1 %vm244_vm3, %v3376_v37 }
  0xaa   : > { %v1054_v40 = vpop.permute.xlu1 %1053  ;;  %v1052_v41 = vpop.permute.xlu0 %1051  ;;  %3499 = vmatprep.subr.mxu1 %v3689_v0  ;;  %1134 = vmatprep.mubr.f32.mxu0 %v3689_v0 }
  0xab   : > { %v1059_v42 = vsel %vm1057_vm7, %v1052_v41, %v1054_v40  ;;  %3501 = vmatprep.mubr.msk.f32.mxu1 %vm3690_vm0, %v3689_v0 }
  0xac   : > { %3383 = vmatprep.subr.msk.mxu0 %vm248_vm2, %v1059_v42 }
  0xae   : > { %v1056_v43 = vpop.permute.xlu1 %1055  ;;  %v1050_v44 = vpop.permute.xlu0 %1049 }
  0xaf   : > { %v1060_v46 = vsel %vm1057_vm7, %v1054_v40, %v1056_v43  ;;  %v1058_v47 = vsel %vm1057_vm7, %v1050_v44, %v1052_v41  ;;  %v3988_v39 = vmul.u32.u64.low 2863311531, %v1729_v35  ;;  %v3989_v40 = vmul.u32.u64.high 2863311531, %v1729_v35, %v3988_v39 }
  0xb0   : > { %3384 = vmatpush1.msk.msra.mxu0 %vm248_vm2, %v1058_v47  ;;  %3500 = vmatpush3.msk.msra.mxu1 %vm248_vm2, %v1060_v46  ;;  %v1759_v43 = vshrl.u32 %v3983_v31, 4 }
  0xb1   : > { %3385 = vmatmul.mubr.msk.f32.vlgmr.msra.gmra.mxu0 %vm244_vm3, %v3382_v45  ;;  %3502 = vmatmul.mubr.msk.f32.vlgmr.msra.gmra.mxu1 %vm244_vm3, %v3382_v45  ;;  %v1737_v45 = vshrl.u32 %v3986_v34, 4 }
  0xb2   : > { %v1221_v48 = vpop.permute.xlu1 %1220  ;;  %v1219_v49 = vpop.permute.xlu0 %1218  ;;  %3504 = vmatprep.subr.mxu1 %v3689_v0  ;;  %1301 = vmatprep.mubr.f32.mxu0 %v3689_v0 }
  0xb3   : > { %v1226_v50 = vsel %vm1224_vm8, %v1219_v49, %v1221_v48  ;;  %3506 = vmatprep.mubr.msk.f32.mxu1 %vm3690_vm0, %v3689_v0 }
  0xb4   : > { %3389 = vmatprep.subr.msk.mxu0 %vm248_vm2, %v1226_v50  ;;  %v1760_v50 = vmul.u32 24, %v1759_v43 }
  0xb6   : > { %v1223_v51 = vpop.permute.xlu1 %1222  ;;  %v1217_v52 = vpop.permute.xlu0 %1216 }
  0xb7   : > { %v1227_v54 = vsel %vm1224_vm8, %v1221_v48, %v1223_v51  ;;  %v1225_v55 = vsel %vm1224_vm8, %v1217_v52, %v1219_v49 }
  0xb8   : > { %3390 = vmatpush1.msk.msra.mxu0 %vm248_vm2, %v1225_v55  ;;  %3505 = vmatpush3.msk.msra.mxu1 %vm248_vm2, %v1227_v54  ;;  %v1748_v54 = vshrl.u32 %v3989_v40, 4 }
  0xb9   : > { %3391 = vmatmul.mubr.msk.f32.vlgmr.msra.gmra.mxu0 %vm244_vm3, %v3388_v53  ;;  %3507 = vmatmul.mubr.msk.f32.vlgmr.msra.gmra.mxu1 %vm244_vm3, %v3388_v53  ;;  %v1738_v53 = vmul.u32 24, %v1737_v45 }
  0xba   : > { %v1388_v56 = vpop.permute.xlu1 %1387  ;;  %v1386_v57 = vpop.permute.xlu0 %1385  ;;  %3509 = vmatprep.subr.mxu1 %v3689_v0  ;;  %1468 = vmatprep.mubr.f32.mxu0 %v3689_v0 }
  0xbb   : > { %v1393_v58 = vsel %vm1391_vm9, %v1386_v57, %v1388_v56  ;;  %3511 = vmatprep.mubr.msk.f32.mxu1 %vm3690_vm0, %v3689_v0 }
  0xbc   : > { %3395 = vmatprep.subr.msk.mxu0 %vm248_vm2, %v1393_v58 }
  0xbe   : > { %v1390_v59 = vpop.permute.xlu1 %1389  ;;  %v1384_v60 = vpop.permute.xlu0 %1383 }
  0xbf   : > { %v1394_v62 = vsel %vm1391_vm9, %v1388_v56, %v1390_v59  ;;  %v1392_v63 = vsel %vm1391_vm9, %v1384_v60, %v1386_v57  ;;  %v1761_v59 = vsub.s32 %v1730_v27, %v1760_v50  ;;  %v1739_v60 = vsub.s32 %v1728_v24, %v1738_v53 }
  0xc0   : > { %3396 = vmatpush1.msk.msra.mxu0 %vm248_vm2, %v1392_v63  ;;  %3510 = vmatpush3.msk.msra.mxu1 %vm248_vm2, %v1394_v62 }
  0xc1   : > { %3397 = vmatmul.mubr.msk.f32.vlgmr.msra.gmra.mxu0 %vm244_vm3, %v3394_v61  ;;  %3512 = vmatmul.mubr.msk.f32.vlgmr.msra.gmra.mxu1 %vm244_vm3, %v3394_v61  ;;  %v1749_v61 = vmul.u32 24, %v1748_v54  ;;  %vm1766_vm11 = vcmp.ne.s32.totalorder %v1761_v59, 0  ;;  %vm1769_vm12 = vcmp.lt.s32.totalorder %v1761_v59, 0  ;;  %vm1764_vm13 = vcmp.ne.s32.totalorder %v1739_v60, 0 }
  0xc2   : > { %v1555_v1 = vpop.permute.xlu1 %1554  ;;  %v1553_v2 = vpop.permute.xlu0 %1552  ;;  %3514 = vmatprep.subr.mxu1 %v3689_v0  ;;  %1635 = vmatprep.mubr.f32.mxu0 %v3689_v0  ;;  %vm1767_vm14 = vcmp.lt.s32.totalorder %v1739_v60, 0  ;;  %vm3994_vm15 = vmand %vm1769_vm12, %vm1766_vm11 }
  0xc3   : > { %v1560_v3 = vsel %vm4227_vm10, %v1553_v2, %v1555_v1  ;;  %3516 = vmatprep.mubr.msk.f32.mxu1 %vm3690_vm0, %v3689_v0 }
  0xc4   : > { %3401 = vmatprep.subr.msk.mxu0 %vm248_vm2, %v1560_v3 }
  0xc6   : > { %v1557_v4 = vpop.permute.xlu1 %1556  ;;  %v1551_v5 = vpop.permute.xlu0 %1550 }
  0xc7   : > { %v1561_v7 = vsel %vm4227_vm10, %v1555_v1, %v1557_v4  ;;  %v1559_v8 = vsel %vm4227_vm10, %v1551_v5, %v1553_v2 }
  0xc8   : > { %3402 = vmatpush1.msk.msra.mxu0 %vm248_vm2, %v1559_v8  ;;  %3515 = vmatpush3.msk.msra.mxu1 %vm248_vm2, %v1561_v7  ;;  %vm3998_vm2 = vmand %vm1767_vm14, %vm1764_vm13  ;;  %vm1800_vm14 = vcmask 203776  }
  0xc9   : > { %3403 = vmatmul.mubr.msk.f32.vlgmr.msra.gmra.mxu0 %vm244_vm3, %v3400_v6  ;;  %3517 = vmatmul.mubr.msk.f32.vlgmr.msra.gmra.mxu1 %vm244_vm3, %v3400_v6  ;;  %v1750_v6 = vsub.s32 %v1729_v35, %v1749_v61 }
  0xca   : > { %3519 = vmatprep.subr.mxu1 %v3689_v0  ;;  %3521 = vmatprep.mubr.msk.f32.mxu1 %vm3690_vm0, %v3689_v0 }
  0xcb   : > { %1896 = vmatprep.mubr.f32.mxu0 %v3689_v0  ;;  %vm1765_vm3 = vcmp.ne.s32.totalorder %v1750_v6, 0  ;;  %vm1768_vm10 = vcmp.lt.s32.totalorder %v1750_v6, 0 }
  0xcc   : > { %vm4007_vm11 = vmand %vm1768_vm10, %vm1765_vm3 }
  0xd3   : > { %v1719_v21 = vpop.permute.xlu0 %1718 }
 0x152   : > { %v321_v9 = vpop.f32.mrf.mxu0 }
 0x154   : > { %v323_v10 = vpop.f32.mrf.mxu0 }
 0x155   : > { %v392_v11 = vpop.f32.mrf.mxu1 }
 0x156   : > { %v471_v13 = vpop.f32.mrf.mxu0 }
 0x157   : > { %v3478_v12 = vpop.f32.mrf.mxu1  ;;  %v472_v41 = vadd.f32 %v471_v13, %v321_v9 }
 0x158   : > { %v473_v15 = vpop.f32.mrf.mxu0  ;;  %v1773_v12 = vadd.s32 24, %v1739_v60 }
 0x159   : > { %v542_v14 = vpop.f32.mrf.mxu1  ;;  %v474_v46 = vadd.f32 %v473_v15, %v323_v10 }
 0x15a   : > { %v543_v42 = vadd.f32 %v542_v14, %v392_v11  ;;  %v1775_v11 = vadd.s32 24, %v1761_v59 }
 0x15b   : > { %v3483_v16 = vpop.f32.mrf.mxu1  ;;  %v635_v18 = vpop.f32.mrf.mxu0 }
 0x15c   : > { %v710_v47 = vadd.f32 %v635_v18, %v472_v41  ;;  %v1778_v24 = vsel %vm3994_vm15, %v1775_v11, %v1761_v59  ;;  %vm1828_vm15 = vcmask 64512  }
 0x15d   : > { %v706_v17 = vpop.f32.mrf.mxu1  ;;  %v637_v22 = vpop.f32.mrf.mxu0  ;;  %vm1781_vm12 = vcmp.lt.s32.totalorder %v1778_v24, 16  ;;  %v3419_v24 = vld [vmem:[%s4224_s3 + $0x20] sm:$0xff] }
 0x15e   : > { %v712_v48 = vadd.f32 %v706_v17, %v543_v42  ;;  %v711_v55 = vadd.f32 %v637_v22, %v474_v46 }
 0x15f   : > { %v3488_v19 = vpop.f32.mrf.mxu1 }
 0x161   : > { %v802_v25 = vpop.f32.mrf.mxu0 }
 0x162   : > { %v873_v20 = vpop.f32.mrf.mxu1  ;;  %v877_v56 = vadd.f32 %v802_v25, %v710_v47  ;;  %v1776_v25 = vsel %vm3998_vm2, %v1773_v12, %v1739_v60  ;;  %vm3409_vm2 = vmneg %vm1800_vm14  ;;  %v3413_v12 = vld [vmem:[%s4224_s3 + $0x10] sm:$0xff] }
 0x163   : > { %v804_v28 = vpop.f32.mrf.mxu0  ;;  %v879_v57 = vadd.f32 %v873_v20, %v712_v48  ;;  %vm1779_vm13 = vcmp.lt.s32.totalorder %v1776_v25, 16 }
 0x164   : > { %v3493_v23 = vpop.f32.mrf.mxu1  ;;  %v878_v62 = vadd.f32 %v804_v28, %v711_v55 }
 0x169   : > { %v1040_v26 = vpop.f32.mrf.mxu1  ;;  %v969_v32 = vpop.f32.mrf.mxu0 }
 0x16a   : > { %v1044_v63 = vadd.f32 %v969_v32, %v877_v56  ;;  %v1046_v1 = vadd.f32 %v1040_v26, %v879_v57 }
 0x16b   : > { %v3498_v29 = vpop.f32.mrf.mxu1  ;;  %v971_v37 = vpop.f32.mrf.mxu0 }
 0x16c   : > { %v1045_v7 = vadd.f32 %v971_v37, %v878_v62  ;;  %v1774_v29 = vadd.s32 24, %v1750_v6 }
 0x16e   : > { %v1777_v39 = vsel %vm4007_vm11, %v1774_v29, %v1750_v6 }
 0x16f   : > { %vm1780_vm10 = vcmp.lt.s32.totalorder %v1777_v39, 16 }
 0x171   : > { %v1207_v36 = vpop.f32.mrf.mxu1  ;;  %v1136_v44 = vpop.f32.mrf.mxu0 }
 0x172   : > { %v1211_v8 = vadd.f32 %v1136_v44, %v1044_v63  ;;  %v1213_v9 = vadd.f32 %v1207_v36, %v1046_v1 }
 0x173   : > { %v3503_v38 = vpop.f32.mrf.mxu1  ;;  %v1138_v51 = vpop.f32.mrf.mxu0 }
 0x174   : > { %v1212_v13 = vadd.f32 %v1138_v51, %v1045_v7  ;;  %v3258_v51 = vld [vmem:[%s4225_s4] sm:$0xff] }
 0x179   : > { %v1374_v49 = vpop.f32.mrf.mxu1  ;;  %v1303_v58 = vpop.f32.mrf.mxu0 }
 0x17a   : > { %v1378_v14 = vadd.f32 %v1303_v58, %v1211_v8  ;;  %v1380_v15 = vadd.f32 %v1374_v49, %v1213_v9  ;;  %v1809_v9 = vld [vmem:[%s4224_s3] sm:$0xff] }
 0x17b   : > { %v3508_v52 = vpop.f32.mrf.mxu1  ;;  %v1305_v2 = vpop.f32.mrf.mxu0 }
 0x17c   : > { %v1379_v18 = vadd.f32 %v1305_v2, %v1212_v13 }
 0x181   : > { %v1541_v3 = vpop.f32.mrf.mxu1  ;;  %v1470_v4 = vpop.f32.mrf.mxu0 }
 0x182   : > { %v1545_v19 = vadd.f32 %v1470_v4, %v1378_v14  ;;  %v1547_v20 = vadd.f32 %v1541_v3, %v1380_v15  ;;  %v3406_v3 = vld [vmem:[%s4224_s3 + $0x8] sm:$0xff] }
 0x183   : > { %v3513_v5 = vpop.f32.mrf.mxu1  ;;  %v1472_v17 = vpop.f32.mrf.mxu0 }
 0x184   : > { %v1546_v26 = vadd.f32 %v1472_v17, %v1379_v18  ;;  %v3416_v18 = vld [vmem:[%s4224_s3 + $0x18] sm:$0xff] }
 0x189   : > { %v1637_v22 = vpop.f32.mrf.mxu0  ;;  %v1708_v23 = vpop.f32.mrf.mxu1 }
 0x18a   : > { %v1712_v27 = vadd.f32 %v1637_v22, %v1545_v19  ;;  %v1714_v28 = vadd.f32 %v1708_v23, %v1547_v20 }
 0x18b   : > { %v1639_v30 = vpop.f32.mrf.mxu0  ;;  %v3518_v31 = vpop.f32.mrf.mxu1 }
 0x18c   : > { %v1713_v33 = vadd.f32 %v1639_v30, %v1546_v26  ;;  %v1721_v34 = vadd.f32 %v1719_v21, %v1712_v27  ;;  %v1723_v35 = vadd.f32 %v1719_v21, %v1714_v28  ;;  %v3422_v30 = vld [vmem:[%s4224_s3 + $0x28] sm:$0xff] }
 0x18e   : > { %v1722_v36 = vadd.f32 %v1719_v21, %v1713_v33  ;;  %v1726_v37 = vmax.f32 %v1723_v35, 0.0  ;;  %v1724_v38 = vmax.f32 %v1721_v34, 0.0 }
 0x190   : > { %v1790_v40 = vsel %vm1781_vm12, %v1726_v37, 0.0  ;;  %v1788_v41 = vsel %vm1779_vm13, %v1724_v38, 0.0  ;;  %v1725_v42 = vmax.f32 %v1722_v36, 0.0  ;;  %v3425_v36 = vld [vmem:[%s4224_s3 + $0x30] sm:$0xff] }
 0x191   : > { %1798 = vrot.lane.b32.xlu0 %v1790_v40, %s3700_s6  ;;  %1794 = vrot.lane.b32.xlu1 %v1788_v41, %s3700_s6 }
 0x192   : > { %v1789_v43 = vsel %vm1780_vm10, %v1725_v42, 0.0  ;;  %v3428_v42 = vld [vmem:[%s4224_s3 + $0x38] sm:$0xff] }
 0x195   : > { %1796 = vrot.lane.b32.xlu1 %v1789_v43, %s3700_s6 }
 0x203   : > { %v1799_v44 = vpop.permute.xlu0 %1798  ;;  %v4013_v45 = vpop.permute.xlu1 %1794 }
 0x204   : > { %v1808_v46 = vsel %vm1800_vm14, %v1799_v44, 0.0  ;;  %v1807_v47 = vsel %vm1800_vm14, 0.0, %v4013_v45 }
 0x205   : > { %1820 = vrot.lane.b32.xlu0 %v1808_v46, %s3691_s10  ;;  %1814 = vrot.lane.b32.xlu1 %v1807_v47, %s3691_s10 }
 0x207   : > { %v1797_v48 = vpop.permute.xlu1 %1796 }
 0x208   : > { %v1801_v49 = vsel %vm1800_vm14, %v4013_v45, %v1797_v48  ;;  %v1802_v50 = vsel %vm1800_vm14, %v1797_v48, %v1799_v44 }
 0x209   : > { %2125 = vrot.lane.b32.xlu0 %v1808_v46, %s3692_s11  ;;  %2119 = vrot.lane.b32.xlu1 %v1807_v47, %s3692_s11 }
 0x20d   : > { %2288 = vrot.lane.b32.xlu0 %v1808_v46, %s3693_s12  ;;  %2282 = vrot.lane.b32.xlu1 %v1807_v47, %s3693_s12 }
 0x211   : > { %2451 = vrot.lane.b32.xlu0 %v1808_v46, %s3694_s13  ;;  %2445 = vrot.lane.b32.xlu1 %v1807_v47, %s3694_s13 }
 0x215   : > { %2614 = vrot.lane.b32.xlu0 %v1808_v46, %s3695_s14  ;;  %2608 = vrot.lane.b32.xlu1 %v1807_v47, %s3695_s14 }
 0x219   : > { %2777 = vrot.lane.b32.xlu0 %v1808_v46, %s3696_s15  ;;  %2771 = vrot.lane.b32.xlu1 %v1807_v47, %s3696_s15 }
 0x21d   : > { %1818 = vrot.lane.b32.xlu0 %v1802_v50, %s3691_s10  ;;  %1816 = vrot.lane.b32.xlu1 %v1801_v49, %s3691_s10 }
 0x221   : > { %2940 = vrot.lane.b32.xlu0 %v1808_v46, %s3697_s16  ;;  %2934 = vrot.lane.b32.xlu1 %v1807_v47, %s3697_s16 }
 0x225   : > { %2123 = vrot.lane.b32.xlu0 %v1802_v50, %s3692_s11  ;;  %2121 = vrot.lane.b32.xlu1 %v1801_v49, %s3692_s11 }
 0x229   : > { %2286 = vrot.lane.b32.xlu0 %v1802_v50, %s3693_s12  ;;  %2284 = vrot.lane.b32.xlu1 %v1801_v49, %s3693_s12 }
 0x22d   : > { %2449 = vrot.lane.b32.xlu0 %v1802_v50, %s3694_s13  ;;  %2447 = vrot.lane.b32.xlu1 %v1801_v49, %s3694_s13 }
 0x231   : > { %2612 = vrot.lane.b32.xlu0 %v1802_v50, %s3695_s14  ;;  %2610 = vrot.lane.b32.xlu1 %v1801_v49, %s3695_s14  ;;  %s215_s14 = sand.u32 1, %s3679_s19  }
 0x232   : > { %s3274_s25 = scalar_lea.sflag [#allocation3], %s215_s14 }
 0x235   : > { %2775 = vrot.lane.b32.xlu0 %v1802_v50, %s3696_s15  ;;  %2773 = vrot.lane.b32.xlu1 %v1801_v49, %s3696_s15  ;;  %s3564_s15 = smul.u32 24, %s215_s14 }
 0x239   : > { %2938 = vrot.lane.b32.xlu0 %v1802_v50, %s3697_s16  ;;  %2936 = vrot.lane.b32.xlu1 %v1801_v49, %s3697_s16  ;;  %s3571_s16 = smul.u32 384, %s3753_s22  ;;  %s3701_s22 = smov [#allocation2]  }
 0x23a   : > { %s3631_s30 = sshll.u32 %s3701_s22, 4  ;;  %s3632_s30 = int_to_ptr.vmem [resolvable:$false] %s3631_s30 }
 0x23b   : > { %s3286_s23 = scalar_lea.hbm %s4226_s5, %s3571_s16  ;;  %s3633_s6 = scalar_lea.vmem %s3632_s30, 768 }
 0x23d   : > { %3101 = vrot.lane.b32.xlu0 %v1802_v50, %s3699_s17  ;;  %3099 = vrot.lane.b32.xlu1 %v1801_v49, %s3699_s17 }
 0x241   : > { %3103 = vrot.lane.b32.xlu0 %v1808_v46, %s3699_s17  ;;  %3097 = vrot.lane.b32.xlu1 %v1807_v47, %s3699_s17  ;;  %s217_s17 = scalar_lea.vmem [#allocation2], %s3564_s15 }
 0x242   : > { %s3288_s7 = sshll.u32 %s217_s17, 4  ;;  %s3289_s7 = int_to_ptr.vmem [resolvable:$true] %s3288_s7 }
 0x243   : > { %s3627_s26 = scalar_lea.vmem %s3289_s7, 384  ;;  %p3634_p0 = scmp.lt.s32.totalorder %s3289_s7, %s3632_s30 }
 0x244   : > { %p3628_p11 = scmp.ne.s32.totalorder %s3289_s7, %s3627_s26  ;;  %p3635_p1 = scmp.lt.s32.totalorder %s3633_s6, %s3627_s26 }
 0x245   : > { %3261 = vperm.xlu1 %3624, %v3258_v51   ;;  %v3431_v51 = vld [vmem:[%s4224_s3 + $0x40] sm:$0xff] }
 0x246   : > { %p3629_p12 = pnand %p3628_p11, %p3770_p5  ;;  %p3636_p2 = por %p3635_p1, %p3634_p0 }
 0x248   : > { %p3630_p13 = pneg %p3629_p12 }
 0x24a   : > { %p3637_p3 = pnand %p3636_p2, %p3630_p13 }
 0x277   : > { %v1821_v52 = vpop.permute.xlu0 %1820  ;;  %v1815_v53 = vpop.permute.xlu1 %1814 }
 0x27b   : > { %v2126_v54 = vpop.permute.xlu0 %2125  ;;  %v2120_v55 = vpop.permute.xlu1 %2119 }
 0x27f   : > { %v2289_v56 = vpop.permute.xlu0 %2288  ;;  %v2283_v57 = vpop.permute.xlu1 %2282 }
 0x283   : > { %v4056_v58 = vpop.permute.xlu0 %2451  ;;  %v4058_v59 = vpop.permute.xlu1 %2445 }
 0x287   : > { %v4060_v60 = vpop.permute.xlu0 %2614  ;;  %v4062_v61 = vpop.permute.xlu1 %2608 }
 0x28b   : > { %v4064_v62 = vpop.permute.xlu0 %2777  ;;  %v4066_v63 = vpop.permute.xlu1 %2771 }
 0x28f   : > { %v1819_v1 = vpop.permute.xlu0 %1818  ;;  %v1817_v2 = vpop.permute.xlu1 %1816 }
 0x290   : > { %v1824_v4 = vsel %vm240_vm1, %v1819_v1, %v1821_v52  ;;  %v1822_v5 = vsel %vm240_vm1, %v1815_v53, %v1817_v2  ;;  %v1823_v6 = vsel %vm240_vm1, %v1817_v2, %v1819_v1  ;;  %vm4236_vm1 = vcmask 637952  }
 0x291   : > { %1862 = vmatprep.subr.mxu0 %v1823_v6  ;;  %3520 = vmatpush3.msra.mxu1 %v1824_v4 }
 0x292   : > { %1863 = vmatpush1.msra.mxu0 %v1822_v5  ;;  %3522 = vmatmul.mubr.msk.f32.vlgmr.msra.gmra.mxu1 %vm1828_vm15, %v3406_v3 }
 0x293   : > { %3524 = vmatprep.subr.mxu1 %v3689_v0  ;;  %v4077_v7 = vpop.permute.xlu0 %2940  ;;  %3407 = vmatmul.mubr.msk.f32.vlgmr.msra.gmra.mxu0 %vm1828_vm15, %v3406_v3  ;;  %v4080_v8 = vpop.permute.xlu1 %2934 }
 0x294   : > { %3525 = vmatpush3.msra.mxu1 %v1802_v50  ;;  %2006 = vmatprep.subr.mxu0 %v1801_v49 }
 0x295   : > { %3410 = vmatpush1.msk.msra.mxu0 %vm3409_vm2, %v4013_v45  ;;  %3526 = vmatprep.mubr.msk.f32.mxu1 %vm3690_vm0, %v3689_v0 }
 0x296   : > { %2040 = vmatprep.mubr.f32.mxu0 %v3689_v0  ;;  %3527 = vmatmul.mubr.msk.f32.vlgmr.msra.gmra.mxu1 %vm1828_vm15, %v1809_v9 }
 0x297   : > { %v2124_v10 = vpop.permute.xlu0 %2123  ;;  %3411 = vmatmul.mubr.msk.f32.vlgmr.msra.gmra.mxu0 %vm1828_vm15, %v1809_v9  ;;  %v2122_v11 = vpop.permute.xlu1 %2121  ;;  %3529 = vmatprep.subr.mxu1 %v3689_v0 }
 0x298   : > { %v2129_v13 = vsel %vm556_vm4, %v2124_v10, %v2126_v54  ;;  %v2127_v14 = vsel %vm556_vm4, %v2120_v55, %v2122_v11  ;;  %v2128_v15 = vsel %vm556_vm4, %v2122_v11, %v2124_v10  ;;  %3531 = vmatprep.mubr.msk.f32.mxu1 %vm3690_vm0, %v3689_v0  ;;  %2200 = vmatprep.mubr.f32.mxu0 %v3689_v0  ;;  %vm4237_vm4 = vmmov %vm4236_vm1 }
 0x299   : > { %2166 = vmatprep.subr.mxu0 %v2128_v15  ;;  %3530 = vmatpush3.msra.mxu1 %v2129_v13 }
 0x29a   : > { %2167 = vmatpush1.msra.mxu0 %v2127_v14  ;;  %3532 = vmatmul.mubr.msk.f32.vlgmr.msra.gmra.mxu1 %vm1828_vm15, %v3413_v12 }
 0x29b   : > { %v2287_v16 = vpop.permute.xlu0 %2286  ;;  %3414 = vmatmul.mubr.msk.f32.vlgmr.msra.gmra.mxu0 %vm1828_vm15, %v3413_v12  ;;  %v2285_v17 = vpop.permute.xlu1 %2284  ;;  %3534 = vmatprep.subr.mxu1 %v3689_v0 }
 0x29c   : > { %v2292_v19 = vsel %vm723_vm5, %v2287_v16, %v2289_v56  ;;  %v2290_v20 = vsel %vm723_vm5, %v2283_v57, %v2285_v17  ;;  %v2291_v21 = vsel %vm723_vm5, %v2285_v17, %v2287_v16  ;;  %3536 = vmatprep.mubr.msk.f32.mxu1 %vm3690_vm0, %v3689_v0  ;;  %2363 = vmatprep.mubr.f32.mxu0 %v3689_v0  ;;  %vm4238_vm5 = vmmov %vm4236_vm1 }
 0x29d   : > { %2329 = vmatprep.subr.mxu0 %v2291_v21  ;;  %3535 = vmatpush3.msra.mxu1 %v2292_v19 }
 0x29e   : > { %2330 = vmatpush1.msra.mxu0 %v2290_v20  ;;  %3537 = vmatmul.mubr.msk.f32.vlgmr.msra.gmra.mxu1 %vm1828_vm15, %v3416_v18 }
 0x29f   : > { %v2450_v22 = vpop.permute.xlu0 %2449  ;;  %3417 = vmatmul.mubr.msk.f32.vlgmr.msra.gmra.mxu0 %vm1828_vm15, %v3416_v18  ;;  %v2448_v23 = vpop.permute.xlu1 %2447  ;;  %3539 = vmatprep.subr.mxu1 %v3689_v0 }
 0x2a0   : > { %v2455_v25 = vsel %vm890_vm6, %v2450_v22, %v4056_v58  ;;  %v2453_v26 = vsel %vm890_vm6, %v4058_v59, %v2448_v23  ;;  %v2454_v27 = vsel %vm890_vm6, %v2448_v23, %v2450_v22  ;;  %3541 = vmatprep.mubr.msk.f32.mxu1 %vm3690_vm0, %v3689_v0  ;;  %2526 = vmatprep.mubr.f32.mxu0 %v3689_v0 }
 0x2a1   : > { %2492 = vmatprep.subr.mxu0 %v2454_v27  ;;  %3540 = vmatpush3.msra.mxu1 %v2455_v25 }
 0x2a2   : > { %2493 = vmatpush1.msra.mxu0 %v2453_v26  ;;  %3542 = vmatmul.mubr.msk.f32.vlgmr.msra.gmra.mxu1 %vm1828_vm15, %v3419_v24 }
 0x2a3   : > { %v2613_v28 = vpop.permute.xlu0 %2612  ;;  %3420 = vmatmul.mubr.msk.f32.vlgmr.msra.gmra.mxu0 %vm1828_vm15, %v3419_v24  ;;  %v2611_v29 = vpop.permute.xlu1 %2610  ;;  %3544 = vmatprep.subr.mxu1 %v3689_v0 }
 0x2a4   : > { %v2618_v31 = vsel %vm1057_vm7, %v2613_v28, %v4060_v60  ;;  %v2616_v32 = vsel %vm1057_vm7, %v4062_v61, %v2611_v29  ;;  %v2617_v33 = vsel %vm1057_vm7, %v2611_v29, %v2613_v28  ;;  %3546 = vmatprep.mubr.msk.f32.mxu1 %vm3690_vm0, %v3689_v0  ;;  %2689 = vmatprep.mubr.f32.mxu0 %v3689_v0 }
 0x2a5   : > { %2655 = vmatprep.subr.mxu0 %v2617_v33  ;;  %3545 = vmatpush3.msra.mxu1 %v2618_v31 }
 0x2a6   : > { %2656 = vmatpush1.msra.mxu0 %v2616_v32  ;;  %3547 = vmatmul.mubr.msk.f32.vlgmr.msra.gmra.mxu1 %vm1828_vm15, %v3422_v30 }
 0x2a7   : > { %v2776_v34 = vpop.permute.xlu0 %2775  ;;  %3423 = vmatmul.mubr.msk.f32.vlgmr.msra.gmra.mxu0 %vm1828_vm15, %v3422_v30  ;;  %v2774_v35 = vpop.permute.xlu1 %2773  ;;  %3549 = vmatprep.subr.mxu1 %v3689_v0 }
 0x2a8   : > { %v2781_v37 = vsel %vm1224_vm8, %v2776_v34, %v4064_v62  ;;  %v2779_v38 = vsel %vm1224_vm8, %v4066_v63, %v2774_v35  ;;  %v2780_v39 = vsel %vm1224_vm8, %v2774_v35, %v2776_v34  ;;  %3551 = vmatprep.mubr.msk.f32.mxu1 %vm3690_vm0, %v3689_v0  ;;  %2852 = vmatprep.mubr.f32.mxu0 %v3689_v0 }
 0x2a9   : > { %2818 = vmatprep.subr.mxu0 %v2780_v39  ;;  %3550 = vmatpush3.msra.mxu1 %v2781_v37 }
 0x2aa   : > { %2819 = vmatpush1.msra.mxu0 %v2779_v38  ;;  %3552 = vmatmul.mubr.msk.f32.vlgmr.msra.gmra.mxu1 %vm1828_vm15, %v3425_v36 }
 0x2ab   : > { %v2939_v40 = vpop.permute.xlu0 %2938  ;;  %3426 = vmatmul.mubr.msk.f32.vlgmr.msra.gmra.mxu0 %vm1828_vm15, %v3425_v36  ;;  %v2937_v41 = vpop.permute.xlu1 %2936  ;;  %3554 = vmatprep.subr.mxu1 %v3689_v0 }
 0x2ac   : > { %v2944_v43 = vsel %vm1391_vm9, %v2939_v40, %v4077_v7  ;;  %v2942_v44 = vsel %vm1391_vm9, %v4080_v8, %v2937_v41  ;;  %v2943_v45 = vsel %vm1391_vm9, %v2937_v41, %v2939_v40  ;;  %3556 = vmatprep.mubr.msk.f32.mxu1 %vm3690_vm0, %v3689_v0  ;;  %3015 = vmatprep.mubr.f32.mxu0 %v3689_v0 }
 0x2ad   : > { %2981 = vmatprep.subr.mxu0 %v2943_v45  ;;  %3555 = vmatpush3.msra.mxu1 %v2944_v43 }
 0x2ae   : > { %2982 = vmatpush1.msra.mxu0 %v2942_v44  ;;  %3557 = vmatmul.mubr.msk.f32.vlgmr.msra.gmra.mxu1 %vm1828_vm15, %v3428_v42 }
 0x2af   : > { %v3102_v46 = vpop.permute.xlu0 %3101  ;;  %3429 = vmatmul.mubr.msk.f32.vlgmr.msra.gmra.mxu0 %vm1828_vm15, %v3428_v42  ;;  %v3100_v47 = vpop.permute.xlu1 %3099  ;;  %3559 = vmatprep.subr.mxu1 %v3689_v0 }
 0x2b0   : > { %v3106_v48 = vsel %vm4236_vm1, %v3100_v47, %v3102_v46  ;;  %3178 = vmatprep.mubr.f32.mxu0 %v3689_v0  ;;  %3561 = vmatprep.mubr.msk.f32.mxu1 %vm3690_vm0, %v3689_v0 }
 0x2b1   : > { %3144 = vmatprep.subr.mxu0 %v3106_v48 }
 0x2b3   : > { %v3104_v49 = vpop.permute.xlu0 %3103  ;;  %v3098_v50 = vpop.permute.xlu1 %3097 }
 0x2b4   : > { %v3107_v52 = vsel %vm4237_vm4, %v3102_v46, %v3104_v49  ;;  %v3105_v53 = vsel %vm4238_vm5, %v3098_v50, %v3100_v47 }
 0x2b5   : > { %3145 = vmatpush1.msra.mxu0 %v3105_v53  ;;  %3560 = vmatpush3.msra.mxu1 %v3107_v52 }
 0x2b6   : > { %3432 = vmatmul.mubr.msk.f32.vlgmr.msra.gmra.mxu0 %vm1828_vm15, %v3431_v51  ;;  %3562 = vmatmul.mubr.msk.f32.vlgmr.msra.gmra.mxu1 %vm1828_vm15, %v3431_v51 }
 0x2c0   : > { %v3262_v42 = vpop.permute.xlu1 %3261 }
 0x352   : > { %v1969_v54 = vpop.f32.mrf.mxu1 }
 0x353   : > { %v1898_v55 = vpop.f32.mrf.mxu0 }
 0x354   : > { %v3523_v0 = vpop.f32.mrf.mxu1 }
 0x355   : > { %v1900_v56 = vpop.f32.mrf.mxu0 }
 0x356   : > { %v2113_v57 = vpop.f32.mrf.mxu1 }
 0x357   : > { %v2042_v58 = vpop.f32.mrf.mxu0  ;;  %v2114_v11 = vadd.f32 %v2113_v57, %v1969_v54 }
 0x358   : > { %v3528_v59 = vpop.f32.mrf.mxu1  ;;  %v2043_v14 = vadd.f32 %v2042_v58, %v1898_v55 }
 0x359   : > { %v2044_v60 = vpop.f32.mrf.mxu0 }
 0x35a   : > { %v2273_v61 = vpop.f32.mrf.mxu1  ;;  %v2045_v17 = vadd.f32 %v2044_v60, %v1900_v56 }
 0x35b   : > { %v2202_v62 = vpop.f32.mrf.mxu0  ;;  %v2279_v18 = vadd.f32 %v2273_v61, %v2114_v11 }
 0x35c   : > { %v3533_v63 = vpop.f32.mrf.mxu1  ;;  %v2277_v19 = vadd.f32 %v2202_v62, %v2043_v14 }
 0x35d   : > { %v2204_v1 = vpop.f32.mrf.mxu0 }
 0x35e   : > { %v2436_v2 = vpop.f32.mrf.mxu1  ;;  %v2278_v22 = vadd.f32 %v2204_v1, %v2045_v17 }
 0x35f   : > { %v2365_v3 = vpop.f32.mrf.mxu0  ;;  %v2442_v23 = vadd.f32 %v2436_v2, %v2279_v18 }
 0x360   : > { %v3538_v4 = vpop.f32.mrf.mxu1  ;;  %v2440_v24 = vadd.f32 %v2365_v3, %v2277_v19 }
 0x361   : > { %v2367_v5 = vpop.f32.mrf.mxu0 }
 0x362   : > { %v2599_v6 = vpop.f32.mrf.mxu1  ;;  %v2441_v27 = vadd.f32 %v2367_v5, %v2278_v22 }
 0x363   : > { %v2528_v7 = vpop.f32.mrf.mxu0  ;;  %v2605_v28 = vadd.f32 %v2599_v6, %v2442_v23 }
 0x364   : > { %v3543_v8 = vpop.f32.mrf.mxu1  ;;  %v2603_v29 = vadd.f32 %v2528_v7, %v2440_v24 }
 0x365   : > { %v2530_v9 = vpop.f32.mrf.mxu0 }
 0x366   : > { %v2762_v10 = vpop.f32.mrf.mxu1  ;;  %v2604_v32 = vadd.f32 %v2530_v9, %v2441_v27 }
 0x367   : > { %v2691_v12 = vpop.f32.mrf.mxu0  ;;  %v2768_v33 = vadd.f32 %v2762_v10, %v2605_v28 }
 0x368   : > { %v3548_v13 = vpop.f32.mrf.mxu1  ;;  %v2766_v34 = vadd.f32 %v2691_v12, %v2603_v29 }
 0x369   : > { %v2693_v15 = vpop.f32.mrf.mxu0 }
 0x36a   : > { %v2925_v16 = vpop.f32.mrf.mxu1  ;;  %v2767_v35 = vadd.f32 %v2693_v15, %v2604_v32 }
 0x36b   : > { %v2854_v20 = vpop.f32.mrf.mxu0  ;;  %v2931_v36 = vadd.f32 %v2925_v16, %v2768_v33 }
 0x36c   : > { %v3553_v21 = vpop.f32.mrf.mxu1  ;;  %v2929_v37 = vadd.f32 %v2854_v20, %v2766_v34 }
 0x36d   : > { %v2856_v25 = vpop.f32.mrf.mxu0 }
 0x36e   : > { %v3088_v26 = vpop.f32.mrf.mxu1  ;;  %v2930_v39 = vadd.f32 %v2856_v25, %v2767_v35 }
 0x36f   : > { %v3017_v30 = vpop.f32.mrf.mxu0  ;;  %v3094_v40 = vadd.f32 %v3088_v26, %v2931_v36 }
 0x370   : > { %v3558_v31 = vpop.f32.mrf.mxu1  ;;  %v3092_v41 = vadd.f32 %v3017_v30, %v2929_v37 }
 0x371   : > { %v3019_v38 = vpop.f32.mrf.mxu0 }
 0x372   : > { %v3093_v45 = vadd.f32 %v3019_v38, %v2930_v39 }
 0x376   : > { %v3180_v43 = vpop.f32.mrf.mxu0  ;;  %v3251_v44 = vpop.f32.mrf.mxu1 }
 0x377   : > { %v3255_v46 = vadd.f32 %v3180_v43, %v3092_v41  ;;  %v3257_v47 = vadd.f32 %v3251_v44, %v3094_v40 }
 0x378   : > { %v3182_v48 = vpop.f32.mrf.mxu0  ;;  %v3563_v49 = vpop.f32.mrf.mxu1 }
 0x379   : > { %v3256_v50 = vadd.f32 %v3182_v48, %v3093_v45  ;;  %v3264_v51 = vadd.f32 %v3262_v42, %v3255_v46  ;;  %v3266_v52 = vadd.f32 %v3262_v42, %v3257_v47 }
 0x37b   : > { %v3265_v53 = vadd.f32 %v3262_v42, %v3256_v50  ;;  %v3267_v54 = vmax.f32 %v3264_v51, 0.0  ;;  %v3269_v55 = vmax.f32 %v3266_v52, 0.0 }
 0x37d   : > { %v3268_v0 = vmax.f32 %v3265_v53, 0.0  ;;  %3270 = vst [vmem:[%s217_s17] sm:$0xff] %v3267_v54  ;;  %3272 = vst [vmem:[%s217_s17 + $0x10] sm:$0xff] %v3269_v55 }
 0x37f   : > { %3271 = vst [vmem:[%s217_s17 + $0x8] sm:$0xff] %v3268_v0 }
 0x380   : > { %3640 = shalt.err (!%p3637_p3)
}
 0x381   : > { %s3641_s10 = scalar_lea.hbm %s3286_s23, 384  ;;  %s3645_s13 = scalar_lea.hbm %s4226_s5, 768 }
 0x382   : > { %p3642_p4 = scmp.ne.s32.totalorder %s3286_s23, %s3641_s10  ;;  %p3646_p9 = scmp.lt.s32.totalorder %s3286_s23, %s4226_s5 }
 0x383   : > { %p3647_p10 = scmp.lt.s32.totalorder %s3645_s13, %s3641_s10 }
 0x384   : > { %p3643_p7 = pnand %p3642_p4, %p3770_p5 }
 0x385   : > { %p3648_p11 = por %p3647_p10, %p3646_p9 }
 0x386   : > { %p3644_p8 = pneg %p3643_p7 }
 0x388   : > { %p3649_p12 = pnand %p3648_p11, %p3644_p8 }
 0x38a   : > { %3652 = shalt.err (!%p3649_p12)
}
 0x38b   : > { %3572 = dma.vmem_to_hbm [thread:$0]  (%p3770_p5), %s3289_s7, 384, %s3286_s23, %s3274_s25  }
 0x38c PF: > { %p3578_p13 = scmp.ge.s32.totalorder %s3687_s21, 2  ;;  %s3300_s16 = sand.u32 1, %s3675_s18  }
 0x38d   : > { %s3301_s17 = scalar_lea.sflag [#allocation3], %s3300_s16 }
 0x38e   : > { %p3575_p0 = pnand %p3578_p13, %p3774_p6 }
 0x390   : > { %p3576_p1 = pneg %p3575_p0 }
 0x392   : > { %3670 = dma.done.wait (%p3576_p1), %s3301_s17, 384  }
 0x393   : > { %3672 = vsyncadd (%p3576_p1), %s3301_s17, 4294966912  ;;  %p15_p2 = scmp.ge.s32.totalorder %s3757_s24, 4   ;;  %s4239_s18 = smov %s3679_s19 }
 0x394   : > { %s4240_s19 = smov %s3683_s20  ;;  %s4241_s20 = smov %s3768_s27 }
 0x395   : > { %s4242_s21 = smov %s3757_s24  ;;  %17 = sbr.rel (!%p15_p2) target bundleno = 3 (0x3), region = 91 }
 0x39a   :  { %3306 = vsyncpa [#allocation3], 1 }
 0x39b   :  { %3308 = vsyncpa [#allocation3 + $0x1], 1 }

</bundles_post_ra>
